<compile_context>
chip_gen: v5e
topology: v5e:2x2
jax: 0.10.0
libtpu: 0.0.40
codegen_flags: <defaults>
</compile_context>

<pallas_src>
import functools
import numpy as np
import jax
import jax.numpy as jnp
from jax.experimental import pallas as pl
from jax.experimental.pallas import tpu as pltpu

LANE = 128
MAX_TM = 1024   # row-tile cap; K/N here are tiny so VMEM stays well under limits


def _round_up(n, m):
    return ((n + m - 1) // m) * m


# ---------------------------------------------------------------------------
# Fused Pallas kernel: relu(x @ W1 + b1) @ W_heads + b_heads, per-segment softmax
# ---------------------------------------------------------------------------
def _encoder_kernel(x_ref, w1_ref, b1_ref, wh_ref, bh_ref, o_ref, *, con_dim, dis_dims):
    # fc1 + ReLU: f32 -> bf16 cast happens HERE (after DMA), bf16 MXU operands,
    # f32 accumulate, f32 epilogue.
    x = x_ref[...].astype(w1_ref.dtype)
    h = jnp.dot(x, w1_ref[...], preferred_element_type=jnp.float32)
    h = jnp.maximum(h + b1_ref[...], 0.0)

    # all heads fused into one lane-dense matmul (columns zero-padded to 128 multiple)
    y = jnp.dot(h.astype(wh_ref.dtype), wh_ref[...], preferred_element_type=jnp.float32)
    y = y + bh_ref[...]

    out = y
    if dis_dims:
        n = y.shape[1]
        # (1, N) lane-index vector; per-segment masks broadcast over rows.
        lane = jax.lax.broadcasted_iota(jnp.int32, (1, n), 1)
        dis_total = sum(dis_dims)
        any_dis = (lane >= con_dim) & (lane < con_dim + dis_total)

        masks = []
        off = con_dim
        for d in dis_dims:  # static tiny segment list -> fully unrolled
            masks.append((lane >= off) & (lane < off + d))
            off += d

        # per-lane max vector assembled from per-segment row maxima
        mvec = jnp.zeros_like(y)
        for mask in masks:
            m = jnp.max(jnp.where(mask, y, -jnp.inf), axis=-1, keepdims=True)  # [TM,1]
            mvec = jnp.where(mask, m, mvec)

        # ONE exp over the whole head block (EUP cost independent of len(dis_dims));
        # exp(-inf) = 0 outside the dis lanes.
        e = jnp.exp(jnp.where(any_dis, y - mvec, -jnp.inf))

        for mask in masks:
            s = jnp.sum(jnp.where(mask, e, 0.0), axis=-1, keepdims=True)       # [TM,1]
            out = jnp.where(mask, e * pl.reciprocal(s, approx=True), out)

    o_ref[...] = out.astype(o_ref.dtype)


def fused_encoder_call(x2, w1t, b1, wh, bh, con_dim, dis_dims):
    B, K = x2.shape
    H = w1t.shape[1]
    N = wh.shape[1]

    if B >= 64:
        # >= 2 grid steps so both v7x TensorCores participate; cap at MAX_TM.
        # Block rows divisible by 8 -> valid even when the last M block is ragged.
        TM = min(MAX_TM, _round_up(pl.cdiv(B, 2), 8))
    else:
        # Single block equal to full array dims: no padding, no slicing glue.
        TM = B
    grid = (pl.cdiv(B, TM),)

    return pl.pallas_call(
        functools.partial(_encoder_kernel, con_dim=con_dim, dis_dims=tuple(dis_dims)),
        out_shape=jax.ShapeDtypeStruct((B, N), jnp.float32),
        grid=grid,
        in_specs=[
            pl.BlockSpec((TM, K), lambda i: (i, 0)),   # x tile (f32, cast in-kernel)
            pl.BlockSpec((K, H), lambda i: (0, 0)),    # W1^T (bf16)
            pl.BlockSpec((1, H), lambda i: (0, 0)),    # b1
            pl.BlockSpec((H, N), lambda i: (0, 0)),    # fused head weights (bf16)
            pl.BlockSpec((1, N), lambda i: (0, 0)),    # fused head bias
        ],
        out_specs=pl.BlockSpec((TM, N), lambda i: (i, 0)),
        compiler_params=pltpu.CompilerParams(dimension_semantics=("parallel",)),
    )(x2, w1t, b1, wh, bh)


# ---------------------------------------------------------------------------
# Parameter init (deterministic, PyTorch-Linear-style uniform init)
# ---------------------------------------------------------------------------
def _init_linear(key, din, dout):
    bound = 1.0 / np.sqrt(din)
    kw, kb = jax.random.split(key)
    w = jax.random.uniform(kw, (dout, din), jnp.float32, -bound, bound)  # torch [out, in]
    b = jax.random.uniform(kb, (dout,), jnp.float32, -bound, bound)
    return (w, b)


def init_params(key, p, l):
    imdim = int(np.prod(p['ldim'][l]))
    enc_h = p['enc_h'][l]
    has_con = p['nz_con'][l] is not None
    has_dis = p['nz_dis'][l] is not None
    keys = jax.random.split(key, 3)
    params = {'fc1': _init_linear(keys[0], imdim, enc_h)}
    if has_con:
        out_dim = sum(p['nz_con'][l:l + 2]) * p['z_params']
        params['fc_zp'] = _init_linear(keys[1], enc_h, out_dim)
    if has_dis:
        aks = jax.random.split(keys[2], len(p['nz_dis'][l]))
        params['fc_alphas'] = [_init_linear(k, enc_h, a) for k, a in zip(aks, p['nz_dis'][l])]
    return params


def prepare_fused_weights(params, p, l, mxu_dtype=jnp.bfloat16):
    """One-time hoisted prep: transpose fc1, concat + pad all head weights to lane width."""
    enc_h = p['enc_h'][l]
    has_con = p['nz_con'][l] is not None
    has_dis = p['nz_dis'][l] is not None

    ws, bs = [], []
    con_dim = 0
    if has_con:
        w, b = params['fc_zp']
        con_dim = w.shape[0]
        ws.append(w.T)
        bs.append(b)
    dis_dims = tuple(p['nz_dis'][l]) if has_dis else ()
    if has_dis:
        for w, b in params['fc_alphas']:
            ws.append(w.T)
            bs.append(b)

    wh = jnp.concatenate(ws, axis=1)
    bh = jnp.concatenate(bs, axis=0)
    n_true = wh.shape[1]
    n_pad = _round_up(n_true, LANE)  # lane-dense output -> unmasked vst stores
    wh = jnp.pad(wh, ((0, 0), (0, n_pad - n_true)))
    bh = jnp.pad(bh, (0, n_pad - n_true))

    return {
        'w1t': params['fc1'][0].T.astype(mxu_dtype),              # [imdim, enc_h]
        'b1': params['fc1'][1].reshape(1, enc_h).astype(jnp.float32),
        'wh': wh.astype(mxu_dtype),                               # [enc_h, n_pad]
        'bh': bh.reshape(1, n_pad).astype(jnp.float32),
        'con_dim': con_dim,
        'dis_dims': dis_dims,
    }


# ---------------------------------------------------------------------------
# Forward pass (matches Encoder.forward)
# ---------------------------------------------------------------------------
def encoder_forward(fused, x, p, l, z_q=None):
    imdim = int(np.prod(p['ldim'][l]))
    constrained = l < p['layers'] - 1
    if constrained:
        # TODO(synk): constrained branch concatenates z_q and applies self.fc3, which is
        # never defined in the reference __init__; not modeled here.
        raise NotImplementedError("constrained Encoder path (fc3) not modeled")

    x2 = x.reshape(-1, imdim)
    y = fused_encoder_call(x2, fused['w1t'], fused['b1'], fused['wh'], fused['bh'],
                           fused['con_dim'], fused['dis_dims'])

    con = y[:, :fused['con_dim']] if fused['con_dim'] else []
    dis = []
    off = fused['con_dim']
    for d in fused['dis_dims']:
        dis.append(y[:, off:off + d])
        off += d
    return con, dis


# ---------------------------------------------------------------------------
# Pure-JAX f32 reference (matches the torch module)
# ---------------------------------------------------------------------------
def encoder_reference(params, x, p, l):
    h = jnp.maximum(x.reshape(x.shape[0], -1) @ params['fc1'][0].T + params['fc1'][1], 0.0)
    con = h @ params['fc_zp'][0].T + params['fc_zp'][1]
    dis = [jax.nn.softmax(h @ w.T + b, axis=-1) for (w, b) in params['fc_alphas']]
    return con, dis


# ---------------------------------------------------------------------------
# Main
# ---------------------------------------------------------------------------
if __name__ == "__main__":
    l = 0
    p = {
        'z_params': 2,
        'layers': 1,             # -> constrained == False for l = 0
        'nz_con': [4],
        'nz_dis': [[3, 4]],
        'ldim': [(4, 16, 16)],   # imdim = 1024
        'enc_h': [32],
    }

    key = jax.random.PRNGKey(0)
    k_params, k_x, k_xbig = jax.random.split(key, 3)
    params = init_params(k_params, p, l)
    fused = prepare_fused_weights(params, p, l)

    # ---- small-batch path (single full-array block, grid=(1,)) ----
    B = 2
    x = jax.random.normal(k_x, (B, *p['ldim'][l]), jnp.float32)  # [2, 4, 16, 16]

    con, dis = encoder_forward(fused, x, p, l)
    con, dis = jax.block_until_ready((con, dis))

    out_dim = sum(p['nz_con'][l:l + 2]) * p['z_params']
    assert con.shape == (B, out_dim)
    assert [d.shape for d in dis] == [(B, 3), (B, 4)]
    # approx reciprocal (EUP vrcp) -> softmax rows sum to 1 only approximately
    for d in dis:
        assert np.allclose(np.asarray(jnp.sum(d, axis=-1)), 1.0, atol=1e-2)

    con_ref, dis_ref = encoder_reference(params, x, p, l)
    # loose tolerance: kernel uses bf16 MXU operands + approx reciprocal
    assert np.allclose(np.asarray(con), np.asarray(con_ref), atol=5e-2, rtol=5e-2)
    for d, dr in zip(dis, dis_ref):
        assert np.allclose(np.asarray(d), np.asarray(dr), atol=5e-2)

    # ---- larger-batch path (grid=(2,), ragged last M block, no x pad / no slice glue) ----
    Bb = 200
    xb = jax.random.normal(k_xbig, (Bb, *p['ldim'][l]), jnp.float32)
    con_b, dis_b = encoder_forward(fused, xb, p, l)
    con_b, dis_b = jax.block_until_ready((con_b, dis_b))
    con_rb, dis_rb = encoder_reference(params, xb, p, l)
    assert con_b.shape == (Bb, out_dim)
    assert np.allclose(np.asarray(con_b), np.asarray(con_rb), atol=5e-2, rtol=5e-2)
    for d, dr in zip(dis_b, dis_rb):
        assert np.allclose(np.asarray(d), np.asarray(dr), atol=5e-2)
        assert np.allclose(np.asarray(jnp.sum(d, axis=-1)), 1.0, atol=1e-2)

    print("KERNEL_OK")
</pallas_src>

<mosaic_0001>
module attributes {stable_mosaic.version = 11 : i64} {
  func.func @_encoder_kernel(%arg0: i32, %arg1: memref<2x1024xf32, #tpu.memory_space<vmem>>, %arg2: memref<1024x32xbf16, #tpu.memory_space<vmem>>, %arg3: memref<1x32xf32, #tpu.memory_space<vmem>>, %arg4: memref<32x128xbf16, #tpu.memory_space<vmem>>, %arg5: memref<1x128xf32, #tpu.memory_space<vmem>>, %arg6: memref<2x128xf32, #tpu.memory_space<vmem>>) attributes {dimension_semantics = [#tpu.dimension_semantics<parallel>], iteration_bounds = array<i64: 1>, scalar_prefetch = 0 : i64, scratch_operands = 0 : i64, tpu.core_type = #tpu.core_type<tc>, window_params = [{transform_indices = @transform_0, window_bounds = array<i64: 2, 1024>}, {pipeline_mode = #tpu.pipeline_mode<synchronous>, transform_indices = @transform_1, window_bounds = array<i64: 1024, 32>}, {pipeline_mode = #tpu.pipeline_mode<synchronous>, transform_indices = @transform_2, window_bounds = array<i64: 1, 32>}, {pipeline_mode = #tpu.pipeline_mode<synchronous>, transform_indices = @transform_3, window_bounds = array<i64: 32, 128>}, {pipeline_mode = #tpu.pipeline_mode<synchronous>, transform_indices = @transform_4, window_bounds = array<i64: 1, 128>}, {transform_indices = @transform_5, window_bounds = array<i64: 2, 128>}]} {
    %c0 = arith.constant 0 : index
    %c0_0 = arith.constant 0 : index
    %0 = vector.load %arg1[%c0, %c0_0] : memref<2x1024xf32, #tpu.memory_space<vmem>>, vector<2x1024xf32>
    %1 = arith.truncf %0 : vector<2x1024xf32> to vector<2x1024xbf16>
    %c0_1 = arith.constant 0 : index
    %c0_2 = arith.constant 0 : index
    %2 = vector.load %arg2[%c0_1, %c0_2] : memref<1024x32xbf16, #tpu.memory_space<vmem>>, vector<1024x32xbf16>
    %cst = arith.constant dense<0.000000e+00> : vector<2x32xf32>
    %3 = tpu.matmul %1, %2, %cst {dimension_numbers = #tpu.dot_dimension_numbers<[1], [0], [0], [1], [0, 0, 1, 1], [], []>} : vector<2x1024xbf16>, vector<1024x32xbf16>, vector<2x32xf32> -> vector<2x32xf32>
    %c0_3 = arith.constant 0 : index
    %c0_4 = arith.constant 0 : index
    %4 = vector.load %arg3[%c0_3, %c0_4] : memref<1x32xf32, #tpu.memory_space<vmem>>, vector<1x32xf32>
    %5 = vector.broadcast %4 : vector<1x32xf32> to vector<2x32xf32>
    %6 = arith.addf %3, %5 : vector<2x32xf32>
    %cst_5 = arith.constant 0.000000e+00 : f32
    %7 = vector.broadcast %cst_5 : f32 to vector<2x32xf32>
    %8 = arith.maximumf %6, %7 : vector<2x32xf32>
    %9 = arith.truncf %8 : vector<2x32xf32> to vector<2x32xbf16>
    %c0_6 = arith.constant 0 : index
    %c0_7 = arith.constant 0 : index
    %10 = vector.load %arg4[%c0_6, %c0_7] : memref<32x128xbf16, #tpu.memory_space<vmem>>, vector<32x128xbf16>
    %cst_8 = arith.constant dense<0.000000e+00> : vector<2x128xf32>
    %11 = tpu.matmul %9, %10, %cst_8 {dimension_numbers = #tpu.dot_dimension_numbers<[1], [0], [0], [1], [0, 0, 1, 1], [], []>} : vector<2x32xbf16>, vector<32x128xbf16>, vector<2x128xf32> -> vector<2x128xf32>
    %c0_9 = arith.constant 0 : index
    %c0_10 = arith.constant 0 : index
    %12 = vector.load %arg5[%c0_9, %c0_10] : memref<1x128xf32, #tpu.memory_space<vmem>>, vector<1x128xf32>
    %13 = vector.broadcast %12 : vector<1x128xf32> to vector<2x128xf32>
    %14 = arith.addf %11, %13 : vector<2x128xf32>
    %15 = tpu.iota {dimensions = array<i32: 1>} : vector<1x128xi32>
    %c8_i32 = arith.constant 8 : i32
    %16 = vector.broadcast %c8_i32 : i32 to vector<1x128xi32>
    %17 = arith.cmpi sge, %15, %16 : vector<1x128xi32>
    %c15_i32 = arith.constant 15 : i32
    %18 = vector.broadcast %c15_i32 : i32 to vector<1x128xi32>
    %19 = arith.cmpi slt, %15, %18 : vector<1x128xi32>
    %20 = arith.andi %17, %19 : vector<1x128xi1>
    %c8_i32_11 = arith.constant 8 : i32
    %21 = vector.broadcast %c8_i32_11 : i32 to vector<1x128xi32>
    %22 = arith.cmpi sge, %15, %21 : vector<1x128xi32>
    %c11_i32 = arith.constant 11 : i32
    %23 = vector.broadcast %c11_i32 : i32 to vector<1x128xi32>
    %24 = arith.cmpi slt, %15, %23 : vector<1x128xi32>
    %25 = arith.andi %22, %24 : vector<1x128xi1>
    %c11_i32_12 = arith.constant 11 : i32
    %26 = vector.broadcast %c11_i32_12 : i32 to vector<1x128xi32>
    %27 = arith.cmpi sge, %15, %26 : vector<1x128xi32>
    %c15_i32_13 = arith.constant 15 : i32
    %28 = vector.broadcast %c15_i32_13 : i32 to vector<1x128xi32>
    %29 = arith.cmpi slt, %15, %28 : vector<1x128xi32>
    %30 = arith.andi %27, %29 : vector<1x128xi1>
    %cst_14 = arith.constant 0.000000e+00 : f32
    %31 = vector.broadcast %cst_14 : f32 to vector<2x128xf32>
    %cst_15 = arith.constant 0xFF800000 : f32
    %32 = vector.shape_cast %25 : vector<1x128xi1> to vector<1x128xi1>
    %33 = vector.broadcast %32 : vector<1x128xi1> to vector<2x128xi1>
    %34 = vector.broadcast %cst_15 : f32 to vector<2x128xf32>
    %35 = arith.select %33, %14, %34 : vector<2x128xi1>, vector<2x128xf32>
    %cst_16 = arith.constant dense<0xFF800000> : vector<2xf32>
    %36 = vector.multi_reduction <maximumf>, %35, %cst_16 [1] : vector<2x128xf32> to vector<2xf32>
    %37 = vector.shape_cast %36 : vector<2xf32> to vector<2x1xf32>
    %38 = vector.shape_cast %25 : vector<1x128xi1> to vector<1x128xi1>
    %39 = vector.broadcast %38 : vector<1x128xi1> to vector<2x128xi1>
    %40 = vector.shape_cast %37 : vector<2x1xf32> to vector<2x1xf32>
    %41 = vector.broadcast %40 : vector<2x1xf32> to vector<2x128xf32>
    %42 = arith.select %39, %41, %31 : vector<2x128xi1>, vector<2x128xf32>
    %cst_17 = arith.constant 0xFF800000 : f32
    %43 = vector.shape_cast %30 : vector<1x128xi1> to vector<1x128xi1>
    %44 = vector.broadcast %43 : vector<1x128xi1> to vector<2x128xi1>
    %45 = vector.broadcast %cst_17 : f32 to vector<2x128xf32>
    %46 = arith.select %44, %14, %45 : vector<2x128xi1>, vector<2x128xf32>
    %cst_18 = arith.constant dense<0xFF800000> : vector<2xf32>
    %47 = vector.multi_reduction <maximumf>, %46, %cst_18 [1] : vector<2x128xf32> to vector<2xf32>
    %48 = vector.shape_cast %47 : vector<2xf32> to vector<2x1xf32>
    %49 = vector.shape_cast %30 : vector<1x128xi1> to vector<1x128xi1>
    %50 = vector.broadcast %49 : vector<1x128xi1> to vector<2x128xi1>
    %51 = vector.shape_cast %48 : vector<2x1xf32> to vector<2x1xf32>
    %52 = vector.broadcast %51 : vector<2x1xf32> to vector<2x128xf32>
    %53 = arith.select %50, %52, %42 : vector<2x128xi1>, vector<2x128xf32>
    %54 = arith.subf %14, %53 : vector<2x128xf32>
    %cst_19 = arith.constant 0xFF800000 : f32
    %55 = vector.shape_cast %20 : vector<1x128xi1> to vector<1x128xi1>
    %56 = vector.broadcast %55 : vector<1x128xi1> to vector<2x128xi1>
    %57 = vector.broadcast %cst_19 : f32 to vector<2x128xf32>
    %58 = arith.select %56, %54, %57 : vector<2x128xi1>, vector<2x128xf32>
    %59 = math.exp %58 : vector<2x128xf32>
    %cst_20 = arith.constant 0.000000e+00 : f32
    %60 = vector.shape_cast %25 : vector<1x128xi1> to vector<1x128xi1>
    %61 = vector.broadcast %60 : vector<1x128xi1> to vector<2x128xi1>
    %62 = vector.broadcast %cst_20 : f32 to vector<2x128xf32>
    %63 = arith.select %61, %59, %62 : vector<2x128xi1>, vector<2x128xf32>
    %cst_21 = arith.constant dense<0.000000e+00> : vector<2xf32>
    %64 = vector.multi_reduction <add>, %63, %cst_21 [1] : vector<2x128xf32> to vector<2xf32>
    %65 = vector.shape_cast %64 : vector<2xf32> to vector<2x1xf32>
    %66 = tpu.reciprocal %65 {approx = true} : vector<2x1xf32> -> vector<2x1xf32>
    %67 = vector.broadcast %66 : vector<2x1xf32> to vector<2x128xf32>
    %68 = arith.mulf %59, %67 : vector<2x128xf32>
    %69 = vector.shape_cast %25 : vector<1x128xi1> to vector<1x128xi1>
    %70 = vector.broadcast %69 : vector<1x128xi1> to vector<2x128xi1>
    %71 = arith.select %70, %68, %14 : vector<2x128xi1>, vector<2x128xf32>
    %cst_22 = arith.constant 0.000000e+00 : f32
    %72 = vector.shape_cast %30 : vector<1x128xi1> to vector<1x128xi1>
    %73 = vector.broadcast %72 : vector<1x128xi1> to vector<2x128xi1>
    %74 = vector.broadcast %cst_22 : f32 to vector<2x128xf32>
    %75 = arith.select %73, %59, %74 : vector<2x128xi1>, vector<2x128xf32>
    %cst_23 = arith.constant dense<0.000000e+00> : vector<2xf32>
    %76 = vector.multi_reduction <add>, %75, %cst_23 [1] : vector<2x128xf32> to vector<2xf32>
    %77 = vector.shape_cast %76 : vector<2xf32> to vector<2x1xf32>
    %78 = tpu.reciprocal %77 {approx = true} : vector<2x1xf32> -> vector<2x1xf32>
    %79 = vector.broadcast %78 : vector<2x1xf32> to vector<2x128xf32>
    %80 = arith.mulf %59, %79 : vector<2x128xf32>
    %81 = vector.shape_cast %30 : vector<1x128xi1> to vector<1x128xi1>
    %82 = vector.broadcast %81 : vector<1x128xi1> to vector<2x128xi1>
    %83 = arith.select %82, %80, %71 : vector<2x128xi1>, vector<2x128xf32>
    %c0_24 = arith.constant 0 : index
    %c0_25 = arith.constant 0 : index
    %84 = vector.load %arg6[%c0_24, %c0_25] : memref<2x128xf32, #tpu.memory_space<vmem>>, vector<2x128xf32>
    tpu.vector_store %arg6[%c0_24, %c0_25], %83 {strides = array<i32>} : memref<2x128xf32, #tpu.memory_space<vmem>>, vector<2x128xf32>,
    return
  }
  func.func @transform_0(%arg0: i32) -> (i32, i32) {
    %c0_i32 = arith.constant 0 : i32
    %c0_i32_0 = arith.constant 0 : i32
    return %arg0, %c0_i32 : i32, i32
  }
  func.func @transform_1(%arg0: i32) -> (i32, i32) {
    %c0_i32 = arith.constant 0 : i32
    %c0_i32_0 = arith.constant 0 : i32
    %c0_i32_1 = arith.constant 0 : i32
    return %c0_i32, %c0_i32_0 : i32, i32
  }
  func.func @transform_2(%arg0: i32) -> (i32, i32) {
    %c0_i32 = arith.constant 0 : i32
    %c0_i32_0 = arith.constant 0 : i32
    %c0_i32_1 = arith.constant 0 : i32
    return %c0_i32, %c0_i32_0 : i32, i32
  }
  func.func @transform_3(%arg0: i32) -> (i32, i32) {
    %c0_i32 = arith.constant 0 : i32
    %c0_i32_0 = arith.constant 0 : i32
    %c0_i32_1 = arith.constant 0 : i32
    return %c0_i32, %c0_i32_0 : i32, i32
  }
  func.func @transform_4(%arg0: i32) -> (i32, i32) {
    %c0_i32 = arith.constant 0 : i32
    %c0_i32_0 = arith.constant 0 : i32
    %c0_i32_1 = arith.constant 0 : i32
    return %c0_i32, %c0_i32_0 : i32, i32
  }
  func.func @transform_5(%arg0: i32) -> (i32, i32) {
    %c0_i32 = arith.constant 0 : i32
    %c0_i32_0 = arith.constant 0 : i32
    return %arg0, %c0_i32 : i32, i32
  }
}

</mosaic_0001>

<bundles_post_ra>
// kernel: tpu_custom_call.1
= control target key start
LH: loop header
LB: loop body
LE: loop exit
PB: predicated region body
PF: predicated region fallthrough
CT: control target
= control target key end

     0   :  { %s1413_s0 = inlined_call_operand.vmem [shape: f32[2,1024], index: 0, kind: input, shape index: {}]   ;;  %s1414_s1 = inlined_call_operand.vmem [shape: bf16[1024,32], index: 1, kind: input, shape index: {}]   ;;  %s1415_s2 = inlined_call_operand.vmem [shape: f32[1,32], index: 2, kind: input, shape index: {}]   ;;  %s1416_s3 = inlined_call_operand.vmem [shape: bf16[32,128], index: 3, kind: input, shape index: {}]   ;;  %s1417_s4 = inlined_call_operand.vmem [shape: f32[1,128], index: 4, kind: input, shape index: {}]   ;;  %s1418_s5 = inlined_call_operand.hbm [shape: f32[2,128], index: 5, kind: output, shape index: {}]  }
   0x1   :  { %v1045_v0 = vld [vmem:[%s1414_s1 + $0x38] sm:$0xff]  ;;  %v1044_v4 = vld [vmem:[%s1414_s1 + $0x30] sm:$0xff]  ;;  %v1043_v8 = vld [vmem:[%s1414_s1 + $0x28] sm:$0xff] }
   0x2   :  { %v1053_v1 = vld [vmem:[%s1414_s1 + $0x78] sm:$0xff]  ;;  %569 = vmatpush.bf16.msra.mxu0 %v1045_v0  ;;  %v1052_v5 = vld [vmem:[%s1414_s1 + $0x70] sm:$0xff]  ;;  %v1051_v9 = vld [vmem:[%s1414_s1 + $0x68] sm:$0xff] }
   0x3   :  { %v1061_v2 = vld [vmem:[%s1414_s1 + $0xb8] sm:$0xff]  ;;  %582 = vmatpush.bf16.msra.mxu1 %v1053_v1  ;;  %v1060_v6 = vld [vmem:[%s1414_s1 + $0xb0] sm:$0xff]  ;;  %v1059_v10 = vld [vmem:[%s1414_s1 + $0xa8] sm:$0xff] }
   0x4   :  { %v1069_v3 = vld [vmem:[%s1414_s1 + $0xf8] sm:$0xff]  ;;  %595 = vmatpush.bf16.msra.mxu2 %v1061_v2  ;;  %v1068_v7 = vld [vmem:[%s1414_s1 + $0xf0] sm:$0xff]  ;;  %v1067_v11 = vld [vmem:[%s1414_s1 + $0xe8] sm:$0xff] }
   0x5   :  { %608 = vmatpush.bf16.msra.mxu3 %v1069_v3  ;;  %v1042_v12 = vld [vmem:[%s1414_s1 + $0x20] sm:$0xff]  ;;  %v1041_v17 = vld [vmem:[%s1414_s1 + $0x18] sm:$0xff]  ;;  %v1040_v21 = vld [vmem:[%s1414_s1 + $0x10] sm:$0xff] }
   0x6   :  { %570 = vmatpush.bf16.msra.mxu0 %v1044_v4  ;;  %v1050_v13 = vld [vmem:[%s1414_s1 + $0x60] sm:$0xff]  ;;  %v1049_v18 = vld [vmem:[%s1414_s1 + $0x58] sm:$0xff]  ;;  %v1048_v22 = vld [vmem:[%s1414_s1 + $0x50] sm:$0xff] }
   0x7   :  { %583 = vmatpush.bf16.msra.mxu1 %v1052_v5  ;;  %v1058_v14 = vld [vmem:[%s1414_s1 + $0xa0] sm:$0xff]  ;;  %v1057_v19 = vld [vmem:[%s1414_s1 + $0x98] sm:$0xff] }
   0x8   :  { %596 = vmatpush.bf16.msra.mxu2 %v1060_v6  ;;  %v1066_v15 = vld [vmem:[%s1414_s1 + $0xe0] sm:$0xff]  ;;  %v1065_v20 = vld [vmem:[%s1414_s1 + $0xd8] sm:$0xff] }
   0x9   :  { %609 = vmatpush.bf16.msra.mxu3 %v1068_v7  ;;  %v22_v16 = vld [vmem:[%s1413_s0] sm:$0xff] }
   0xa   :  { %571 = vmatpush.bf16.msra.mxu0 %v1043_v8  ;;  %26 = vst [vmem:[#allocation1] ss:$4 sm:$0xff] %v22_v16 }
   0xb   :  { %584 = vmatpush.bf16.msra.mxu1 %v1051_v9 }
   0xc   :  { %597 = vmatpush.bf16.msra.mxu2 %v1059_v10 }
   0xd   :  { %610 = vmatpush.bf16.msra.mxu3 %v1067_v11 }
   0xe   :  { %572 = vmatpush.bf16.msra.mxu0 %v1042_v12 }
   0xf   :  { %585 = vmatpush.bf16.msra.mxu1 %v1050_v13 }
  0x10   :  { %598 = vmatpush.bf16.msra.mxu2 %v1058_v14 }
  0x11   :  { %611 = vmatpush.bf16.msra.mxu3 %v1066_v15 }
  0x12   :  { %573 = vmatpush.bf16.msra.mxu0 %v1041_v17 }
  0x13   :  { %586 = vmatpush.bf16.msra.mxu1 %v1049_v18 }
  0x14   :  { %10 = vsyncpa [#allocation3], 0  ;;  %599 = vmatpush.bf16.msra.mxu2 %v1057_v19  ;;  %v1056_v23 = vld [vmem:[%s1414_s1 + $0x90] sm:$0xff]  ;;  %v1039_v25 = vld [vmem:[%s1414_s1 + $0x8] sm:$0xff]  ;;  %vm695_vm0 = vcmask 261120   ;;  %vm724_vm4 = vcmask 1041408  }
  0x15   :  { %612 = vmatpush.bf16.msra.mxu3 %v1065_v20  ;;  %v1064_v24 = vld [vmem:[%s1414_s1 + $0xd0] sm:$0xff]  ;;  %v1047_v26 = vld [vmem:[%s1414_s1 + $0x48] sm:$0xff]  ;;  %v1038_v30 = vld [vmem:[%s1414_s1] sm:$0xff]  ;;  %s764_s30 = sshll.u32 %s1418_s5, 4  ;;  %s765_s30 = int_to_ptr.hbm [resolvable:$true] %s764_s30 }
  0x16   :  { %574 = vmatpush.bf16.msra.mxu0 %v1040_v21  ;;  %v1055_v27 = vld [vmem:[%s1414_s1 + $0x88] sm:$0xff]  ;;  %v1046_v31 = vld [vmem:[%s1414_s1 + $0x40] sm:$0xff]  ;;  %v1077_v34 = vld [vmem:[%s1414_s1 + $0x138] sm:$0xff] }
  0x17   :  { %587 = vmatpush.bf16.msra.mxu1 %v1048_v22  ;;  %v1063_v28 = vld [vmem:[%s1414_s1 + $0xc8] sm:$0xff]  ;;  %v1054_v32 = vld [vmem:[%s1414_s1 + $0x80] sm:$0xff]  ;;  %v1085_v35 = vld [vmem:[%s1414_s1 + $0x178] sm:$0xff] }
  0x18   :  { %600 = vmatpush.bf16.msra.mxu2 %v1056_v23  ;;  %v23_v29 = vld [vmem:[%s1413_s0 + $0x8] sm:$0xff]  ;;  %v1062_v33 = vld [vmem:[%s1414_s1 + $0xc0] sm:$0xff]  ;;  %v31_v36 = vld.sshfl [vmem:[#allocation1 + $0x10] sm:$0xff pattern:$0x73625140] }
  0x19   :  { %613 = vmatpush.bf16.msra.mxu3 %v1064_v24  ;;  %28 = vst [vmem:[#allocation1 + $0x20] ss:$4 sm:$0xff] %v23_v29  ;;  %v29_v37 = vld.sshfl [vmem:[#allocation1] sm:$0xff pattern:$0x73625140]  ;;  %v1093_v40 = vld [vmem:[%s1414_s1 + $0x1b8] sm:$0xff]  ;;  %v47_v42 = vpack.c.bf16 %v31_v36, %v31_v36 }
  0x1a   :  { %575 = vmatpush.bf16.msra.mxu0 %v1039_v25  ;;  %v32_v38 = vld.sshfl [vmem:[#allocation1 + $0x18] sm:$0xff pattern:$0x73625140]  ;;  %v30_v39 = vld.sshfl [vmem:[#allocation1 + $0x8] sm:$0xff pattern:$0x73625140]  ;;  %v45_v43 = vpack.c.bf16 %v29_v37, %v29_v37 }
  0x1b   :  { %588 = vmatpush.bf16.msra.mxu1 %v1047_v26  ;;  %v1101_v41 = vld [vmem:[%s1414_s1 + $0x1f8] sm:$0xff]  ;;  %v48_v44 = vpack.c.bf16 %v32_v38, %v32_v38  ;;  %v46_v45 = vpack.c.bf16 %v30_v39, %v30_v39  ;;  %v1076_v46 = vld [vmem:[%s1414_s1 + $0x130] sm:$0xff]  ;;  %v1075_v50 = vld [vmem:[%s1414_s1 + $0x128] sm:$0xff] }
  0x1c   :  { %601 = vmatpush.bf16.msra.mxu2 %v1055_v27  ;;  %v1084_v47 = vld [vmem:[%s1414_s1 + $0x170] sm:$0xff]  ;;  %v1083_v51 = vld [vmem:[%s1414_s1 + $0x168] sm:$0xff]  ;;  %v1074_v54 = vld [vmem:[%s1414_s1 + $0x120] sm:$0xff] }
  0x1d   :  { %614 = vmatpush.bf16.msra.mxu3 %v1063_v28  ;;  %v1092_v48 = vld [vmem:[%s1414_s1 + $0x1b0] sm:$0xff]  ;;  %v1091_v52 = vld [vmem:[%s1414_s1 + $0x1a8] sm:$0xff]  ;;  %v1082_v55 = vld [vmem:[%s1414_s1 + $0x160] sm:$0xff] }
  0x1e   :  { %576 = vmatpush.bf16.msra.mxu0 %v1038_v30  ;;  %v1100_v49 = vld [vmem:[%s1414_s1 + $0x1f0] sm:$0xff]  ;;  %v1099_v53 = vld [vmem:[%s1414_s1 + $0x1e8] sm:$0xff]  ;;  %v1090_v56 = vld [vmem:[%s1414_s1 + $0x1a0] sm:$0xff] }
  0x1f   :  { %589 = vmatpush.bf16.msra.mxu1 %v1046_v31  ;;  %v1098_v57 = vld [vmem:[%s1414_s1 + $0x1e0] sm:$0xff]  ;;  %v1073_v58 = vld [vmem:[%s1414_s1 + $0x118] sm:$0xff]  ;;  %v1072_v62 = vld [vmem:[%s1414_s1 + $0x110] sm:$0xff] }
  0x20   :  { %602 = vmatpush.bf16.msra.mxu2 %v1054_v32  ;;  %v1081_v59 = vld [vmem:[%s1414_s1 + $0x158] sm:$0xff]  ;;  %v1080_v63 = vld [vmem:[%s1414_s1 + $0x150] sm:$0xff]  ;;  %v1071_v2 = vld [vmem:[%s1414_s1 + $0x108] sm:$0xff] }
  0x21   :  { %615 = vmatpush.bf16.msra.mxu3 %v1062_v33  ;;  %577 = vmatmul.bf16.vlgmr.msra.gmra.mxu0 %v45_v43  ;;  %v1089_v60 = vld [vmem:[%s1414_s1 + $0x198] sm:$0xff]  ;;  %v1088_v0 = vld [vmem:[%s1414_s1 + $0x190] sm:$0xff]  ;;  %v1079_v3 = vld [vmem:[%s1414_s1 + $0x148] sm:$0xff] }
  0x22   :  { %621 = vmatpush.bf16.msrb.mxu0 %v1077_v34  ;;  %590 = vmatmul.bf16.vlgmr.msra.gmra.mxu1 %v46_v45  ;;  %v1097_v61 = vld [vmem:[%s1414_s1 + $0x1d8] sm:$0xff]  ;;  %v1096_v1 = vld [vmem:[%s1414_s1 + $0x1d0] sm:$0xff]  ;;  %v1087_v4 = vld [vmem:[%s1414_s1 + $0x188] sm:$0xff] }
  0x23   :  { %634 = vmatpush.bf16.msrb.mxu1 %v1085_v35  ;;  %603 = vmatmul.bf16.vlgmr.msra.gmra.mxu2 %v47_v42  ;;  %v1095_v5 = vld [vmem:[%s1414_s1 + $0x1c8] sm:$0xff]  ;;  %v1070_v6 = vld [vmem:[%s1414_s1 + $0x100] sm:$0xff]  ;;  %v35_v12 = vld.sshfl [vmem:[#allocation1 + $0x30] sm:$0xff pattern:$0x73625140] }
  0x24   :  { %647 = vmatpush.bf16.msrb.mxu2 %v1093_v40  ;;  %616 = vmatmul.bf16.vlgmr.msra.gmra.mxu3 %v48_v44  ;;  %v1078_v7 = vld [vmem:[%s1414_s1 + $0x140] sm:$0xff]  ;;  %v34_v11 = vld.sshfl [vmem:[#allocation1 + $0x28] sm:$0xff pattern:$0x73625140]  ;;  %v51_v16 = vpack.c.bf16 %v35_v12, %v35_v12 }
  0x25   :  { %660 = vmatpush.bf16.msrb.mxu3 %v1101_v41  ;;  %v1086_v8 = vld [vmem:[%s1414_s1 + $0x180] sm:$0xff]  ;;  %v36_v13 = vld.sshfl [vmem:[#allocation1 + $0x38] sm:$0xff pattern:$0x73625140]  ;;  %v50_v15 = vpack.c.bf16 %v34_v11, %v34_v11  ;;  %v1103_v18 = vld [vmem:[%s1416_s3 + $0x8] sm:$0xff] }
  0x26   :  { %622 = vmatpush.bf16.msrb.mxu0 %v1076_v46  ;;  %v1094_v9 = vld [vmem:[%s1414_s1 + $0x1c0] sm:$0xff]  ;;  %v52_v17 = vpack.c.bf16 %v36_v13, %v36_v13 }
  0x27   :  { %635 = vmatpush.bf16.msrb.mxu1 %v1084_v47  ;;  %v33_v10 = vld.sshfl [vmem:[#allocation1 + $0x20] sm:$0xff pattern:$0x73625140]  ;;  %v712_v47 = vlaneseq }
  0x28   :  { %648 = vmatpush.bf16.msrb.mxu2 %v1092_v48  ;;  %v49_v14 = vpack.c.bf16 %v33_v10, %v33_v10  ;;  %v1102_v24 = vld [vmem:[%s1416_s3] sm:$0xff] }
  0x29   :  { %661 = vmatpush.bf16.msrb.mxu3 %v1100_v49  ;;  %v1105_v26 = vld [vmem:[%s1415_s2] ss:$0 sm:$0xff]  ;;  %v713_v48 = vand.u32 127, %v712_v47 }
  0x2a   :  { %623 = vmatpush.bf16.msrb.mxu0 %v1075_v50  ;;  %v1106_v49 = vld [vmem:[%s1417_s4] ss:$0 sm:$0xff]  ;;  %s1139_s4 = smov [#allocation2]  }
  0x2b   :  { %636 = vmatpush.bf16.msrb.mxu1 %v1083_v51  ;;  %vm714_vm1 = vcmp.ge.s32.totalorder %v713_v48, 8  ;;  %vm717_vm2 = vcmp.lt.s32.totalorder %v713_v48, 11  ;;  %vm715_vm5 = vcmp.lt.s32.totalorder %v713_v48, 15  ;;  %vm719_vm6 = vcmp.ge.s32.totalorder %v713_v48, 11  ;;  %s762_s27 = sshll.u32 %s1139_s4, 4  ;;  %s763_s27 = int_to_ptr.vmem [resolvable:$true] %s762_s27 }
  0x2c   :  { %649 = vmatpush.bf16.msrb.mxu2 %v1091_v52  ;;  %vm1381_vm3 = vmand %vm714_vm1, %vm717_vm2 }
  0x2d   :  { %662 = vmatpush.bf16.msrb.mxu3 %v1099_v53  ;;  %vm1388_vm7 = vmand %vm719_vm6, %vm715_vm5 }
  0x2e   :  { %624 = vmatpush.bf16.msrb.mxu0 %v1074_v54  ;;  %vm716_vm8 = vmand %vm714_vm1, %vm715_vm5 }
  0x2f   :  { %637 = vmatpush.bf16.msrb.mxu1 %v1082_v55 }
  0x30   :  { %650 = vmatpush.bf16.msrb.mxu2 %v1090_v56 }
  0x31   :  { %663 = vmatpush.bf16.msrb.mxu3 %v1098_v57 }
  0x32   :  { %625 = vmatpush.bf16.msrb.mxu0 %v1073_v58 }
  0x33   :  { %638 = vmatpush.bf16.msrb.mxu1 %v1081_v59 }
  0x34   :  { %651 = vmatpush.bf16.msrb.mxu2 %v1089_v60 }
  0x35   :  { %664 = vmatpush.bf16.msrb.mxu3 %v1097_v61 }
  0x36   :  { %626 = vmatpush.bf16.msrb.mxu0 %v1072_v62 }
  0x37   :  { %639 = vmatpush.bf16.msrb.mxu1 %v1080_v63 }
  0x38   :  { %652 = vmatpush.bf16.msrb.mxu2 %v1088_v0 }
  0x39   :  { %665 = vmatpush.bf16.msrb.mxu3 %v1096_v1 }
  0x3a   :  { %627 = vmatpush.bf16.msrb.mxu0 %v1071_v2 }
  0x3b   :  { %640 = vmatpush.bf16.msrb.mxu1 %v1079_v3 }
  0x3c   :  { %653 = vmatpush.bf16.msrb.mxu2 %v1087_v4 }
  0x3d   :  { %666 = vmatpush.bf16.msrb.mxu3 %v1095_v5 }
  0x3e   :  { %628 = vmatpush.bf16.msrb.mxu0 %v1070_v6 }
  0x3f   :  { %641 = vmatpush.bf16.msrb.mxu1 %v1078_v7 }
  0x40   :  { %654 = vmatpush.bf16.msrb.mxu2 %v1086_v8 }
  0x41   :  { %667 = vmatpush.bf16.msrb.mxu3 %v1094_v9  ;;  %629 = vmatmul.bf16.vlgmr.msrb.gmra.mxu0 %v49_v14 }
  0x42   :  { %642 = vmatmul.bf16.vlgmr.msrb.gmra.mxu1 %v50_v15  ;;  %705 = vmatpush.bf16.msra.mxu0 %v1103_v18 }
  0x43   :  { %655 = vmatmul.bf16.vlgmr.msrb.gmra.mxu2 %v51_v16 }
  0x44   :  { %668 = vmatmul.bf16.vlgmr.msrb.gmra.mxu3 %v52_v17 }
  0x46   :  { %706 = vmatpush.bf16.msra.mxu0 %v1102_v24 }
  0x9e   :  { %v578_v19 = vpop.f32.mrf.mxu0 }
  0x9f   :  { %v591_v20 = vpop.f32.mrf.mxu1  ;;  %v579_v29 = vadd.f32 %v1105_v26, %v578_v19 }
  0xa1   :  { %v592_v30 = vadd.f32 %v591_v20, %v579_v29 }
  0xa6   :  { %v604_v21 = vpop.f32.mrf.mxu2  ;;  %v580_v23 = vpop.f32.mrf.mxu0 }
  0xa7   :  { %v617_v22 = vpop.f32.mrf.mxu3  ;;  %v593_v25 = vpop.f32.mrf.mxu1  ;;  %v605_v31 = vadd.f32 %v604_v21, %v592_v30 }
  0xa9   :  { %v618_v32 = vadd.f32 %v617_v22, %v605_v31 }
  0xae   :  { %v606_v27 = vpop.f32.mrf.mxu2 }
  0xaf   :  { %v619_v28 = vpop.f32.mrf.mxu3 }
  0xbe   :  { %v630_v33 = vpop.f32.mrf.mxu0 }
  0xbf   :  { %v643_v34 = vpop.f32.mrf.mxu1  ;;  %v631_v35 = vadd.f32 %v630_v33, %v618_v32 }
  0xc1   :  { %v644_v36 = vadd.f32 %v643_v34, %v631_v35 }
  0xc6   :  { %v656_v37 = vpop.f32.mrf.mxu2  ;;  %v632_v40 = vpop.f32.mrf.mxu0 }
  0xc7   :  { %v669_v38 = vpop.f32.mrf.mxu3  ;;  %v657_v39 = vadd.f32 %v656_v37, %v644_v36  ;;  %v645_v41 = vpop.f32.mrf.mxu1 }
  0xc9   :  { %v670_v42 = vadd.f32 %v669_v38, %v657_v39 }
  0xcb   :  { %v673_v43 = vmax.f32 %v670_v42, 0.0 }
  0xcd   :  { %v674_v44 = vpack.c.bf16 %v673_v43, %v673_v43 }
  0xce   :  { %v658_v45 = vpop.f32.mrf.mxu2 }
  0xcf   :  { %v671_v46 = vpop.f32.mrf.mxu3  ;;  %1037 = vmatmul.msk.bf16.vlgmr.msra.gmra.mxu0 %vm695_vm0, %v674_v44 }
 0x14c   :  { %v708_v50 = vpop.f32.mrf.mxu0 }
 0x14d   :  { %v709_v52 = vadd.f32 %v1106_v49, %v708_v50 }
 0x14f   :  { %v723_v53 = vsel %vm1381_vm3, %v709_v52, -inf  ;;  %v731_v57 = vsel %vm1388_vm7, %v709_v52, -inf }
 0x150   :  { %v725_v54 = vsel %vm724_vm4, %v723_v53, -inf  ;;  %v732_v58 = vsel %vm724_vm4, %v731_v57, -inf }
 0x151   :  { %726 = vmax.xlane.f32.xlu0 %v725_v54 }
 0x154   :  { %v710_v56 = vpop.f32.mrf.mxu0 }
 0x159   :  { %733 = vmax.xlane.f32.xlu0 %v732_v58 }
 0x1c4   :  { %v727_v59 = vpop.xlane.xlu0 %726 }
 0x1c5   :  { %v728_v60 = vsel %vm1381_vm3, %v727_v59, 0.0 }
 0x1cc   :  { %v734_v61 = vpop.xlane.xlu0 %733 }
 0x1cd   :  { %v735_v62 = vsel %vm1388_vm7, %v734_v61, %v728_v60 }
 0x1ce   :  { %v736_v63 = vsub.f32 %v709_v52, %v735_v62 }
 0x1d0   :  { %v739_v0 = vsel %vm716_vm8, %v736_v63, -inf }
 0x1d1   :  { %v740_v1 = vmul.f32 1.442695, %v739_v0 }
 0x1d3   :  { %1107 = vpow2.f32 %v740_v1 }
 0x1d9   :  { %v1108_v2 = vpop.eup %1107 }
 0x1da   :  { %v742_v3 = vsel %vm1381_vm3, %v1108_v2, 0.0  ;;  %v749_v5 = vsel %vm1388_vm7, %v1108_v2, 0.0 }
 0x1db   :  { %v743_v4 = vsel %vm724_vm4, %v742_v3, 0.0  ;;  %v750_v6 = vsel %vm724_vm4, %v749_v5, 0.0 }
 0x1dc   :  { %744 = vadd.xlane.f32.xlu1 %v743_v4 }
 0x1e4   :  { %751 = vadd.xlane.f32.xlu1 %v750_v6 }
 0x24f   :  { %v745_v7 = vpop.xlane.xlu1 %744 }
 0x250   :  { %1109 = vrcp.f32 %v745_v7 }
 0x256   :  { %v1110_v9 = vpop.eup %1109 }
 0x257   :  { %v752_v8 = vpop.xlane.xlu1 %751  ;;  %v747_v10 = vmul.f32 %v1110_v9, %v1108_v2 }
 0x258   :  { %1111 = vrcp.f32 %v752_v8 }
 0x259   :  { %v748_v13 = vsel %vm1381_vm3, %v747_v10, %v709_v52 }
 0x25e   :  { %v1112_v11 = vpop.eup %1111 }
 0x25f   :  { %v754_v12 = vmul.f32 %v1112_v11, %v1108_v2 }
 0x261   :  { %v755_v14 = vsel %vm1388_vm7, %v754_v12, %v748_v13 }
 0x262   :  { %756 = vst [vmem:[#allocation2] sm:$0x3] %v755_v14 }
 0x263   :  { %767 = dma.vmem_to_hbm [thread:$0]  %s763_s27, 32, %s765_s30, [#allocation3]  }
 0x264   :  { %1137 = dma.done.wait [#allocation3], 32  }
 0x265   :  { %1138 = vsyncadd [#allocation3], 4294967264 }
 0x266   :  { %772 = vsyncpa [#allocation3], 1 }

</bundles_post_ra>
